<compile_context>
chip_gen: v5e
topology: v5e:2x2
jax: 0.10.0
libtpu: 0.0.40
codegen_flags: <defaults>
</compile_context>

<pallas_src>
import math

import jax
import jax.numpy as jnp
from jax import lax
from jax.experimental import pallas as pl
from jax.experimental.pallas import tpu as pltpu


def _round_up(n, m):
    return (n + m - 1) // m * m


def _vmem_capacity_bytes():
    try:
        return int(pltpu.get_tpu_info().vmem_capacity_bytes)
    except Exception:
        return 64 * 1024 * 1024  # conservative fallback: v7x per-TC VMEM


def _mlp_body(x_ref, w1_ref, b1_ref, w2_ref, b2_ref, w3_ref, b3_ref, y_ref, z_ref):
    # x_ref: (TB, D) batch-major tile streamed straight from HBM.
    # All activations are feature-major -- (32,TB), (16,TB), (1,TB) -- so the
    # batch sits on the 128-wide lane axis and every store is lane-dense.
    x = x_ref[...].astype(w1_ref.dtype)          # in-kernel cast (VPU has slack)

    # Linear(D,32) + ReLU: contract D of both operands -> (32, TB) on the MXU.
    h1 = lax.dot_general(w1_ref[...], x, (((1,), (1,)), ((), ())),
                         preferred_element_type=jnp.float32) + b1_ref[...]
    h1 = jnp.maximum(h1, 0.0)

    # Linear(32,16) + ReLU -> z: (16, TB).
    z = jnp.dot(w2_ref[...], h1.astype(w2_ref.dtype),
                preferred_element_type=jnp.float32) + b2_ref[...]
    z = jnp.maximum(z, 0.0)

    # Head Linear(16,1) + Sigmoid: a length-16 contraction would waste the MXU;
    # lane-multiply + sublane reduce on the VPU/XLU instead.
    logits = jnp.sum(z * w3_ref[...], axis=0, keepdims=True) + b3_ref[...]
    y_ref[...] = pl.reciprocal(1.0 + jnp.exp(-logits)).astype(y_ref.dtype)

    if z_ref is not None:
        z_ref[...] = z.astype(z_ref.dtype)


def _mlp_kernel_y(x_ref, w1, b1, w2, b2, w3, b3, y_ref):
    _mlp_body(x_ref, w1, b1, w2, b2, w3, b3, y_ref, None)


def _mlp_kernel_yz(x_ref, w1, b1, w2, b2, w3, b3, y_ref, z_ref):
    _mlp_body(x_ref, w1, b1, w2, b2, w3, b3, y_ref, z_ref)


def _choose_tb(B, D, x_bytes, z_bytes, block_b, budget_bytes):
    """Pick the batch-tile (lane) size."""
    if B <= 128:
        return B                                   # single (partial-lane) tile
    # streamed bytes per batch lane (double-buffered x in, y out, optional z out)
    stream = 2 * (D * x_bytes + 4 + 16 * z_bytes)
    # f32 intermediates (h1, z, logits) live per lane
    live = 4 * (32 + 16 + 1)
    tb = budget_bytes // (stream + live)
    tb = min(tb, block_b, _round_up(B, 128))
    # keep >= 2 grid steps so dimension_semantics=("parallel",) can shard the
    # batch across both TensorCores on v7x
    tb = min(tb, _round_up((B + 1) // 2, 128))
    return max(128, (tb // 128) * 128)


def mlp_classifier_forward(x, params, return_z=False, *,
                           block_b=32768, compute_dtype=None,
                           z_dtype=jnp.float32):
    """Forward pass of MLPClassifier.

    x: (B, D) batch-major, streamed in its own dtype (store it bf16 upstream to
    halve the dominant HBM read).  params: w1 (32,D), b1 (32,1), w2 (16,32),
    b2 (16,1), w3 (16,1), b3 (1,1).  Returns y_pred (B,1) [and z (B,16)].
    """
    B, D = x.shape
    compute_dtype = jnp.dtype(compute_dtype if compute_dtype is not None else x.dtype)
    x_bytes = jnp.dtype(x.dtype).itemsize
    z_bytes = jnp.dtype(z_dtype).itemsize if return_z else 0

    capacity = _vmem_capacity_bytes()
    budget = min(int(0.55 * capacity), 96 * 1024 * 1024)
    TB = _choose_tb(B, D, x_bytes, z_bytes, int(block_b), budget)
    grid = (pl.cdiv(B, TB),)        # ragged last tile handled by Pallas clipping

    w1 = params["w1"].astype(compute_dtype)       # (32, D)
    w2 = params["w2"].astype(compute_dtype)       # (16, 32)
    w3 = params["w3"].astype(jnp.float32)         # (16, 1) column for the VPU head
    b1 = params["b1"].astype(jnp.float32)         # (32, 1)
    b2 = params["b2"].astype(jnp.float32)         # (16, 1)
    b3 = params["b3"].astype(jnp.float32)         # (1, 1)

    # VMEM accounting -> explicit limit (stays under v7x's 64 MiB per-TC VMEM,
    # grows past the old 32 MiB cap on v5e/v6e).
    w_bytes = jnp.dtype(compute_dtype).itemsize
    need = (2 * TB * (D * x_bytes + 4 + 16 * z_bytes)      # streamed, double-buffered
            + TB * 4 * (32 + 16 + 1)                       # f32 intermediates
            + 2 * ((32 * D + 16 * 32) * w_bytes + 65 * 4)  # resident weights/biases
            + (4 << 20))                                   # headroom
    vmem_limit = int(min(max(need, 32 << 20), int(0.9 * capacity)))

    const = lambda shape: pl.BlockSpec(shape, lambda i: (0, 0))
    in_specs = [
        pl.BlockSpec((TB, D), lambda i: (i, 0)),   # x: streamed batch-major blocks
        const((32, D)), const((32, 1)),            # w1, b1: VMEM-resident
        const((16, 32)), const((16, 1)),           # w2, b2
        const((16, 1)), const((1, 1)),             # w3, b3
    ]
    # TODO(synk): single-buffer the constant weight specs (pl.Buffered(1)); they
    # are tiny for typical D so left at the default double-buffering here.

    y_spec = pl.BlockSpec((1, TB), lambda i: (0, i))        # lane-dense stores
    compiler_params = pltpu.CompilerParams(
        dimension_semantics=("parallel",),                  # shard batch over TCs (v7x)
        vmem_limit_bytes=vmem_limit,
    )
    args = (x, w1, b1, w2, b2, w3, b3)

    if return_z:
        y_fm, z_fm = pl.pallas_call(
            _mlp_kernel_yz,
            out_shape=(jax.ShapeDtypeStruct((1, B), jnp.float32),
                       jax.ShapeDtypeStruct((16, B), z_dtype)),
            grid=grid,
            in_specs=in_specs,
            out_specs=(y_spec, pl.BlockSpec((16, TB), lambda i: (0, i))),
            compiler_params=compiler_params,
        )(*args)
        # Back to torch (batch-major) convention; keep feature-major downstream
        # when possible to skip this extra pass over z.
        return y_fm.T, z_fm.T

    y_fm = pl.pallas_call(
        _mlp_kernel_y,
        out_shape=jax.ShapeDtypeStruct((1, B), jnp.float32),
        grid=grid,
        in_specs=in_specs,
        out_specs=y_spec,
        compiler_params=compiler_params,
    )(*args)
    return y_fm.T


def init_params(key, input_dim):
    """Deterministic torch-nn.Linear-style init (uniform(-1/sqrt(fan_in), +))."""
    def linear(key, fan_in, fan_out):
        kw, kb = jax.random.split(key)
        bound = 1.0 / math.sqrt(fan_in)
        w = jax.random.uniform(kw, (fan_out, fan_in), jnp.float32, -bound, bound)
        b = jax.random.uniform(kb, (fan_out, 1), jnp.float32, -bound, bound)
        return w, b

    k1, k2, k3 = jax.random.split(key, 3)
    w1, b1 = linear(k1, input_dim, 32)    # (32, D), (32, 1)
    w2, b2 = linear(k2, 32, 16)           # (16, 32), (16, 1)
    w3, b3 = linear(k3, 16, 1)            # (1, 16), (1, 1)
    # w3 stored as a (16, 1) column so the kernel's lane-broadcast multiply works.
    return dict(w1=w1, b1=b1, w2=w2, b2=b2, w3=w3.T, b3=b3)


def _reference(x, p):
    """Pure-JAX reference in torch (batch-major) convention."""
    h1 = jnp.maximum(x @ p["w1"].T + p["b1"].T, 0.0)
    z = jnp.maximum(h1 @ p["w2"].T + p["b2"].T, 0.0)
    y = jax.nn.sigmoid(z @ p["w3"] + p["b3"].T)
    return y, z


if __name__ == "__main__":
    key = jax.random.PRNGKey(0)
    kx, kx2, kp = jax.random.split(key, 3)

    batch, input_dim = 8, 16
    x = jax.random.normal(kx, (batch, input_dim), jnp.float32)
    params = init_params(kp, input_dim)

    # 1) f32, return_z=True, single tile (B < 128)
    y_pred, z = mlp_classifier_forward(x, params, return_z=True)
    y_pred, z = jax.block_until_ready((y_pred, z))
    y_ref, z_ref = _reference(x, params)
    assert y_pred.shape == (batch, 1) and z.shape == (batch, 16)
    assert jnp.allclose(y_pred, y_ref, atol=1e-5), "y_pred mismatch (f32, small)"
    assert jnp.allclose(z, z_ref, atol=1e-5), "z mismatch (f32, small)"

    # 2) f32, return_z=True, multi-step grid with a ragged (partial) last tile
    x2 = jax.random.normal(kx2, (300, input_dim), jnp.float32)
    y2, z2 = mlp_classifier_forward(x2, params, return_z=True, block_b=128)
    y2, z2 = jax.block_until_ready((y2, z2))
    y2_ref, z2_ref = _reference(x2, params)
    assert y2.shape == (300, 1) and z2.shape == (300, 16)
    assert jnp.allclose(y2, y2_ref, atol=1e-4), "y_pred mismatch (f32, ragged grid)"
    assert jnp.allclose(z2, z2_ref, atol=1e-4), "z mismatch (f32, ragged grid)"

    # 3) bf16 x stream (halved HBM read), y-only path (z stream dropped entirely)
    y3 = mlp_classifier_forward(x2.astype(jnp.bfloat16), params, block_b=256)
    y3 = jax.block_until_ready(y3)
    assert y3.shape == (300, 1)
    assert jnp.allclose(y3, y2_ref, atol=3e-2), "y_pred mismatch (bf16)"

    print("KERNEL_OK")
</pallas_src>

<mosaic_0001>
module attributes {stable_mosaic.version = 11 : i64} {
  func.func @_mlp_kernel_yz(%arg0: i32, %arg1: memref<8x16xf32, #tpu.memory_space<vmem>>, %arg2: memref<32x16xf32, #tpu.memory_space<vmem>>, %arg3: memref<32x1xf32, #tpu.memory_space<vmem>>, %arg4: memref<16x32xf32, #tpu.memory_space<vmem>>, %arg5: memref<16x1xf32, #tpu.memory_space<vmem>>, %arg6: memref<16x1xf32, #tpu.memory_space<vmem>>, %arg7: memref<1x1xf32, #tpu.memory_space<vmem>>, %arg8: memref<1x8xf32, #tpu.memory_space<vmem>>, %arg9: memref<16x8xf32, #tpu.memory_space<vmem>>) attributes {dimension_semantics = [#tpu.dimension_semantics<parallel>], iteration_bounds = array<i64: 1>, scalar_prefetch = 0 : i64, scratch_operands = 0 : i64, tpu.core_type = #tpu.core_type<tc>, window_params = [{transform_indices = @transform_0, window_bounds = array<i64: 8, 16>}, {pipeline_mode = #tpu.pipeline_mode<synchronous>, transform_indices = @transform_1, window_bounds = array<i64: 32, 16>}, {pipeline_mode = #tpu.pipeline_mode<synchronous>, transform_indices = @transform_2, window_bounds = array<i64: 32, 1>}, {pipeline_mode = #tpu.pipeline_mode<synchronous>, transform_indices = @transform_3, window_bounds = array<i64: 16, 32>}, {pipeline_mode = #tpu.pipeline_mode<synchronous>, transform_indices = @transform_4, window_bounds = array<i64: 16, 1>}, {pipeline_mode = #tpu.pipeline_mode<synchronous>, transform_indices = @transform_5, window_bounds = array<i64: 16, 1>}, {pipeline_mode = #tpu.pipeline_mode<synchronous>, transform_indices = @transform_6, window_bounds = array<i64: 1, 1>}, {transform_indices = @transform_7, window_bounds = array<i64: 1, 8>}, {transform_indices = @transform_8, window_bounds = array<i64: 16, 8>}]} {
    %c0 = arith.constant 0 : index
    %c0_0 = arith.constant 0 : index
    %0 = vector.load %arg1[%c0, %c0_0] : memref<8x16xf32, #tpu.memory_space<vmem>>, vector<8x16xf32>
    %c0_1 = arith.constant 0 : index
    %c0_2 = arith.constant 0 : index
    %1 = vector.load %arg2[%c0_1, %c0_2] : memref<32x16xf32, #tpu.memory_space<vmem>>, vector<32x16xf32>
    %cst = arith.constant dense<0.000000e+00> : vector<32x8xf32>
    %2 = tpu.matmul %1, %0, %cst {dimension_numbers = #tpu.dot_dimension_numbers<[1], [1], [0], [0], [0, 0, 1, 0], [], []>} : vector<32x16xf32>, vector<8x16xf32>, vector<32x8xf32> -> vector<32x8xf32>
    %c0_3 = arith.constant 0 : index
    %c0_4 = arith.constant 0 : index
    %3 = vector.load %arg3[%c0_3, %c0_4] : memref<32x1xf32, #tpu.memory_space<vmem>>, vector<32x1xf32>
    %4 = vector.broadcast %3 : vector<32x1xf32> to vector<32x8xf32>
    %5 = arith.addf %2, %4 : vector<32x8xf32>
    %cst_5 = arith.constant 0.000000e+00 : f32
    %6 = vector.broadcast %cst_5 : f32 to vector<32x8xf32>
    %7 = arith.maximumf %5, %6 : vector<32x8xf32>
    %c0_6 = arith.constant 0 : index
    %c0_7 = arith.constant 0 : index
    %8 = vector.load %arg4[%c0_6, %c0_7] : memref<16x32xf32, #tpu.memory_space<vmem>>, vector<16x32xf32>
    %cst_8 = arith.constant dense<0.000000e+00> : vector<16x8xf32>
    %9 = tpu.matmul %8, %7, %cst_8 {dimension_numbers = #tpu.dot_dimension_numbers<[1], [0], [0], [1], [0, 0, 1, 1], [], []>} : vector<16x32xf32>, vector<32x8xf32>, vector<16x8xf32> -> vector<16x8xf32>
    %c0_9 = arith.constant 0 : index
    %c0_10 = arith.constant 0 : index
    %10 = vector.load %arg5[%c0_9, %c0_10] : memref<16x1xf32, #tpu.memory_space<vmem>>, vector<16x1xf32>
    %11 = vector.broadcast %10 : vector<16x1xf32> to vector<16x8xf32>
    %12 = arith.addf %9, %11 : vector<16x8xf32>
    %cst_11 = arith.constant 0.000000e+00 : f32
    %13 = vector.broadcast %cst_11 : f32 to vector<16x8xf32>
    %14 = arith.maximumf %12, %13 : vector<16x8xf32>
    %c0_12 = arith.constant 0 : index
    %c0_13 = arith.constant 0 : index
    %15 = vector.load %arg6[%c0_12, %c0_13] : memref<16x1xf32, #tpu.memory_space<vmem>>, vector<16x1xf32>
    %16 = vector.broadcast %15 : vector<16x1xf32> to vector<16x8xf32>
    %17 = arith.mulf %14, %16 : vector<16x8xf32>
    %cst_14 = arith.constant dense<0.000000e+00> : vector<8xf32>
    %18 = vector.multi_reduction <add>, %17, %cst_14 [0] : vector<16x8xf32> to vector<8xf32>
    %19 = vector.shape_cast %18 : vector<8xf32> to vector<1x8xf32>
    %c0_15 = arith.constant 0 : index
    %c0_16 = arith.constant 0 : index
    %20 = vector.load %arg7[%c0_15, %c0_16] : memref<1x1xf32, #tpu.memory_space<vmem>>, vector<1x1xf32>
    %21 = vector.broadcast %20 : vector<1x1xf32> to vector<1x8xf32>
    %22 = arith.addf %19, %21 : vector<1x8xf32>
    %cst_17 = arith.constant 0.000000e+00 : f32
    %23 = vector.broadcast %cst_17 : f32 to vector<1x8xf32>
    %24 = arith.subf %23, %22 : vector<1x8xf32>
    %25 = math.exp %24 : vector<1x8xf32>
    %cst_18 = arith.constant 1.000000e+00 : f32
    %26 = vector.broadcast %cst_18 : f32 to vector<1x8xf32>
    %27 = arith.addf %26, %25 : vector<1x8xf32>
    %28 = tpu.reciprocal %27 : vector<1x8xf32> -> vector<1x8xf32>
    %c0_19 = arith.constant 0 : index
    %c0_20 = arith.constant 0 : index
    %29 = vector.load %arg8[%c0_19, %c0_20] : memref<1x8xf32, #tpu.memory_space<vmem>>, vector<1x8xf32>
    tpu.vector_store %arg8[%c0_19, %c0_20], %28 {strides = array<i32>} : memref<1x8xf32, #tpu.memory_space<vmem>>, vector<1x8xf32>,
    %c0_21 = arith.constant 0 : index
    %c0_22 = arith.constant 0 : index
    %30 = vector.load %arg9[%c0_21, %c0_22] : memref<16x8xf32, #tpu.memory_space<vmem>>, vector<16x8xf32>
    tpu.vector_store %arg9[%c0_21, %c0_22], %14 {strides = array<i32>} : memref<16x8xf32, #tpu.memory_space<vmem>>, vector<16x8xf32>,
    return
  }
  func.func @transform_0(%arg0: i32) -> (i32, i32) {
    %c0_i32 = arith.constant 0 : i32
    %c0_i32_0 = arith.constant 0 : i32
    return %arg0, %c0_i32 : i32, i32
  }
  func.func @transform_1(%arg0: i32) -> (i32, i32) {
    %c0_i32 = arith.constant 0 : i32
    %c0_i32_0 = arith.constant 0 : i32
    %c0_i32_1 = arith.constant 0 : i32
    return %c0_i32, %c0_i32_0 : i32, i32
  }
  func.func @transform_2(%arg0: i32) -> (i32, i32) {
    %c0_i32 = arith.constant 0 : i32
    %c0_i32_0 = arith.constant 0 : i32
    %c0_i32_1 = arith.constant 0 : i32
    return %c0_i32, %c0_i32_0 : i32, i32
  }
  func.func @transform_3(%arg0: i32) -> (i32, i32) {
    %c0_i32 = arith.constant 0 : i32
    %c0_i32_0 = arith.constant 0 : i32
    %c0_i32_1 = arith.constant 0 : i32
    return %c0_i32, %c0_i32_0 : i32, i32
  }
  func.func @transform_4(%arg0: i32) -> (i32, i32) {
    %c0_i32 = arith.constant 0 : i32
    %c0_i32_0 = arith.constant 0 : i32
    %c0_i32_1 = arith.constant 0 : i32
    return %c0_i32, %c0_i32_0 : i32, i32
  }
  func.func @transform_5(%arg0: i32) -> (i32, i32) {
    %c0_i32 = arith.constant 0 : i32
    %c0_i32_0 = arith.constant 0 : i32
    %c0_i32_1 = arith.constant 0 : i32
    return %c0_i32, %c0_i32_0 : i32, i32
  }
  func.func @transform_6(%arg0: i32) -> (i32, i32) {
    %c0_i32 = arith.constant 0 : i32
    %c0_i32_0 = arith.constant 0 : i32
    %c0_i32_1 = arith.constant 0 : i32
    return %c0_i32, %c0_i32_0 : i32, i32
  }
  func.func @transform_7(%arg0: i32) -> (i32, i32) {
    %c0_i32 = arith.constant 0 : i32
    %c0_i32_0 = arith.constant 0 : i32
    return %c0_i32, %arg0 : i32, i32
  }
  func.func @transform_8(%arg0: i32) -> (i32, i32) {
    %c0_i32 = arith.constant 0 : i32
    %c0_i32_0 = arith.constant 0 : i32
    return %c0_i32, %arg0 : i32, i32
  }
}

</mosaic_0001>

<bundles_post_ra>
// kernel: tpu_custom_call.1
= control target key start
LH: loop header
LB: loop body
LE: loop exit
PB: predicated region body
PF: predicated region fallthrough
CT: control target
= control target key end

     0   :  { %s386_s0 = inlined_call_operand.vmem [shape: f32[8,16], index: 0, kind: input, shape index: {}]   ;;  %s387_s1 = inlined_call_operand.vmem [shape: f32[32,16], index: 1, kind: input, shape index: {}]   ;;  %s388_s2 = inlined_call_operand.vmem [shape: f32[32,1], index: 2, kind: input, shape index: {}]   ;;  %s389_s3 = inlined_call_operand.vmem [shape: f32[16,32], index: 3, kind: input, shape index: {}]   ;;  %s390_s4 = inlined_call_operand.vmem [shape: f32[16,1], index: 4, kind: input, shape index: {}]   ;;  %s391_s5 = inlined_call_operand.vmem [shape: f32[16,1], index: 5, kind: input, shape index: {}]   ;;  %s392_s6 = inlined_call_operand.<no memory space> [shape: f32[1,1], index: 6, kind: input, shape index: {}]   ;;  %s393_s7 = inlined_call_operand.hbm [shape: f32[1,8], index: 7, kind: output, shape index: {0}]   ;;  %s394_s8 = inlined_call_operand.vmem [shape: f32[16,8], index: 8, kind: output, shape index: {1}]  }
   0x1   :  { %v14_v0 = vstv %s392_s6 }
   0x2   :  { %15 = vst [vmem:[#allocation2] sm:$0x1] %v14_v0 }
   0x3   :  { %v31_v1 = vld [vmem:[%s386_s0] sm:$0xff]  ;;  %vm60_vm0 = vcmask 130048   ;;  %v39_v2 = vld [vmem:[%s388_s2 + $0x18] sm:$0xff]  ;;  %v34_v3 = vld [vmem:[%s387_s1 + $0x10] sm:$0xff]  ;;  %v276_v6 = vmov 0  }
   0x4   :  { %236 = vmatpush.xpose.msk.msra.mxu2 %vm60_vm0, %v31_v1  ;;  %229 = vmatpush.xpose.msk.msra.mxu0 %vm60_vm0, %v31_v1  ;;  %v32_v4 = vld [vmem:[%s387_s1] sm:$0xff]  ;;  %v37_v5 = vld [vmem:[%s388_s2 + $0x8] sm:$0xff] }
   0x5   :  { %243 = vset.pattern.permute.xlu0 %v276_v6  ;;  %244 = vset.pattern.permute.xlu1 %v276_v6 }
   0x6   :  { %57 = vperm.xlu0 %243, %v39_v2   ;;  %47 = vperm.xlu1 %244, %v37_v5  }
   0x7   :  { %16 = vsyncpa [#allocation4], 0  ;;  %232 = vmatmul.msk.f32.vlgmr.msra.gmra.mxu2 %vm60_vm0, %v34_v3  ;;  %230 = vmatmul.msk.f32.vlgmr.msra.gmra.mxu0 %vm60_vm0, %v32_v4  ;;  %v38_v7 = vld [vmem:[%s388_s2 + $0x10] sm:$0xff]  ;;  %v36_v8 = vld [vmem:[%s388_s2] sm:$0xff]  ;;  %vm123_vm1 = vcmask 261120   ;;  %vm169_vm2 = vcmask 64512  }
   0x8   :  { %245 = vset.pattern.permute.xlu2 %v276_v6  ;;  %v35_v9 = vld [vmem:[%s387_s1 + $0x18] sm:$0xff]  ;;  %v33_v10 = vld [vmem:[%s387_s1 + $0x8] sm:$0xff]  ;;  %v155_v11 = vld [vmem:[%s391_s5] sm:$0xff]  ;;  %s216_s14 = sshll.u32 %s393_s7, 4  ;;  %vm205_vm6 = vcmask 57344   ;;  %s217_s14 = int_to_ptr.hbm [resolvable:$true] %s216_s14 }
   0x9   :  { %v156_v12 = vld [vmem:[%s391_s5 + $0x8] sm:$0xff]  ;;  %v111_v13 = vld [vmem:[%s390_s4] sm:$0xff] }
   0xa   :  { %115 = vperm.xlu2 %245, %v111_v13   ;;  %v112_v14 = vld [vmem:[%s390_s4 + $0x8] sm:$0xff]  ;;  %v179_v19 = vld [vmem:[#allocation2] sm:$0x1] }
   0xb   :  { %v109_v32 = vld [vmem:[%s389_s3] sm:$0xff]  ;;  %v110_v33 = vld [vmem:[%s389_s3 + $0x8] sm:$0xff] }
   0xe   :  { %52 = vperm.xlu0 %243, %v38_v7   ;;  %42 = vperm.xlu1 %244, %v36_v8  }
   0xf   :  { %233 = vmatmul.msk.f32.gmra.mxu2 %vm60_vm0, %v35_v9  ;;  %231 = vmatmul.msk.f32.gmra.mxu0 %vm60_vm0, %v33_v10 }
  0x12   :  { %120 = vperm.xlu2 %245, %v112_v14  }
  0x16   :  { %159 = vperm.xlu0 %243, %v155_v11   ;;  %164 = vperm.xlu1 %244, %v156_v12  }
  0x1a   :  { %182 = vperm.xlu2 %245, %v179_v19  }
  0x64   :  { %v116_v34 = vpop.permute.xlu2 %115 }
  0x6c   :  { %v121_v38 = vpop.permute.xlu2 %120 }
  0x74   :  { %v183_v53 = vpop.permute.xlu2 %182 }
  0x75   :  { %v185_v55 = vperm.slane %v183_v53, 0 }
  0x78   :  { %v58_v15 = vpop.permute.xlu0 %57  ;;  %v48_v18 = vpop.permute.xlu1 %47 }
  0x80   :  { %v53_v20 = vpop.permute.xlu0 %52  ;;  %v43_v27 = vpop.permute.xlu1 %42 }
  0x84   :  { %v93_v16 = vpop.f32.mrf.mxu0 }
  0x85   :  { %v94_v28 = vadd.f32 %v93_v16, %v43_v27 }
  0x87   :  { %v105_v31 = vmax.f32 %v94_v28, 0.0 }
  0x88   :  { %v160_v41 = vpop.permute.xlu0 %159  ;;  %v165_v44 = vpop.permute.xlu1 %164 }
  0x8a   :  { %v99_v17 = vpop.f32.mrf.mxu2 }
  0x8b   :  { %v100_v23 = vadd.f32 %v99_v17, %v53_v20 }
  0x8c   :  { %v96_v21 = vpop.f32.mrf.mxu0 }
  0x8d   :  { %v97_v25 = vadd.f32 %v96_v21, %v48_v18  ;;  %v107_v29 = vmax.f32 %v100_v23, 0.0 }
  0x8f   :  { %v106_v30 = vmax.f32 %v97_v25, 0.0 }
  0x92   :  { %v102_v22 = vpop.f32.mrf.mxu2 }
  0x93   :  { %v103_v24 = vadd.f32 %v102_v22, %v58_v15 }
  0x95   :  { %v108_v26 = vmax.f32 %v103_v24, 0.0 }
  0x97   :  { %142 = vmatpush.msra.mxu1 %v108_v26  ;;  %237 = vmatpush.msra.mxu3 %v108_v26 }
  0x99   :  { %143 = vmatpush.msra.mxu1 %v107_v29  ;;  %238 = vmatpush.msra.mxu3 %v107_v29 }
  0x9b   :  { %144 = vmatpush.msra.mxu1 %v106_v30  ;;  %239 = vmatpush.msra.mxu3 %v106_v30 }
  0x9d   :  { %145 = vmatpush.msra.mxu1 %v105_v31  ;;  %240 = vmatpush.msra.mxu3 %v105_v31 }
  0x9e   :  { %234 = vmatmul.msk.f32.vlgmr.msra.gmra.mxu1 %vm123_vm1, %v109_v32  ;;  %235 = vmatmul.msk.f32.vlgmr.msra.gmra.mxu3 %vm123_vm1, %v110_v33 }
 0x11b   :  { %v147_v35 = vpop.f32.mrf.mxu1 }
 0x11c   :  { %v148_v36 = vadd.f32 %v147_v35, %v116_v34 }
 0x11e   :  { %v153_v37 = vmax.f32 %v148_v36, 0.0 }
 0x120   :  { %207 = vst.msk [vmem:[%s394_s8] sm:$0xff] %vm169_vm2, %v153_v37  ;;  %v167_v42 = vmul.f32 %v160_v41, %v153_v37 }
 0x121   :  { %v150_v39 = vpop.f32.mrf.mxu3 }
 0x122   :  { %v151_v40 = vadd.f32 %v150_v39, %v121_v38  ;;  %v170_v46 = vsel %vm169_vm2, %v167_v42, 0.0 }
 0x124   :  { %v154_v43 = vmax.f32 %v151_v40, 0.0 }
 0x126   :  { %v168_v45 = vmul.f32 %v165_v44, %v154_v43  ;;  %208 = vst.msk [vmem:[%s394_s8 + $0x8] sm:$0xff] %vm169_vm2, %v154_v43  ;;  %s277_s8 = smov [#allocation3]  }
 0x127   :  { %s214_s12 = sshll.u32 %s277_s8, 4  ;;  %s215_s12 = int_to_ptr.vmem [resolvable:$true] %s214_s12 }
 0x128   :  { %v171_v47 = vsel %vm169_vm2, %v168_v45, 0.0 }
 0x129   :  { %v172_v48 = vadd.f32 %v171_v47, %v170_v46 }
 0x12b   :  { %v173_v49 = vrot.slane %v172_v48, 4 }
 0x12d   :  { %v174_v50 = vadd.f32 %v173_v49, %v172_v48 }
 0x12f   :  { %v175_v51 = vrot.slane %v174_v50, 2 }
 0x131   :  { %v176_v52 = vadd.f32 %v175_v51, %v174_v50 }
 0x133   :  { %v177_v54 = vrot.slane %v176_v52, 1 }
 0x135   :  { %v178_v56 = vadd.f32 %v177_v54, %v176_v52 }
 0x137   :  { %v186_v57 = vadd.f32 %v185_v55, %v178_v56 }
 0x139   :  { %v187_v58 = vsub.f32 0.0, %v186_v57 }
 0x13b   :  { %v188_v59 = vmul.f32 1.442695, %v187_v58 }
 0x13d   :  { %246 = vpow2.f32 %v188_v59 }
 0x143   :  { %v247_v60 = vpop.eup %246 }
 0x144   :  { %v190_v61 = vadd.f32 1.0, %v247_v60 }
 0x146   :  { %248 = vrcp.f32 %v190_v61  ;;  %v202_v1 = vand.u32 2147483648, %v190_v61  ;;  %v200_v3 = vand.u32 2147483647, %v190_v61  ;;  %vm196_vm4 = vweird.f32 %v190_v61 }
 0x148   :  { %v203_v5 = vor.u32 1.1754944e-38, %v202_v1  ;;  %vm201_vm7 = vcmp.eq.f32.partialorder %v200_v3, 8.507059e+37 }
 0x14c   :  { %v249_v62 = vpop.eup %248 }
 0x14d   :  { %v192_v63 = vmul.f32 %v249_v62, %v190_v61  ;;  %vm197_vm3 = vweird.f32 %v249_v62 }
 0x14e   :  { %vm198_vm5 = vmor %vm196_vm4, %vm197_vm3 }
 0x14f   :  { %v193_v0 = vsub.f32 1.0, %v192_v63 }
 0x151   :  { %v194_v2 = vmul.f32 %v249_v62, %v193_v0 }
 0x153   :  { %v195_v4 = vadd.f32 %v249_v62, %v194_v2 }
 0x155   :  { %v199_v6 = vsel %vm198_vm5, %v249_v62, %v195_v4 }
 0x156   :  { %v204_v7 = vsel %vm201_vm7, %v203_v5, %v199_v6 }
 0x157   :  { %206 = vst.msk [vmem:[#allocation3] sm:$0x1] %vm205_vm6, %v204_v7 }
 0x158   :  { %219 = dma.vmem_to_hbm [thread:$0]  %s215_s12, 16, %s217_s14, [#allocation4]  }
 0x159   :  { %274 = dma.done.wait [#allocation4], 16  }
 0x15a   :  { %275 = vsyncadd [#allocation4], 4294967280 }
 0x15b   :  { %228 = vsyncpa [#allocation4], 1 }

</bundles_post_ra>
